<compile_context>
chip_gen: v7x
topology: tpu7x:2x2x1
jax: 0.10.0
libtpu: 0.0.40
codegen_flags: <defaults>
</compile_context>

<pallas_src>
import functools

import jax
import jax.numpy as jnp
from jax.experimental import pallas as pl
from jax.experimental.pallas import tpu as pltpu


def _pw_conv_bn_leaky_kernel(x_ref, w_ref, shift_ref, o_ref, *, leaky_slope):
    # x_ref:     (1, C, T)   input pixels (channels on sublanes, pixels on lanes)
    # w_ref:     (OC, C)     conv weight with the BN scale already folded in
    # shift_ref: (OC, 1)     BN shift = beta - running_mean * scale
    # o_ref:     (1, OC, T)  output tile; T is a multiple of 128 -> lane-dense stores
    y = jnp.dot(w_ref[...], x_ref[0], preferred_element_type=jnp.float32)
    y = y + shift_ref[...]
    y = jnp.where(y > 0, y, leaky_slope * y)
    o_ref[0] = y.astype(o_ref.dtype)


def pointwise_conv_bn_leaky(x, weight, gamma, beta, running_mean, running_var,
                            *, leaky_slope=0.1, eps=1e-5,
                            mxu_dtype=jnp.float32, max_tile_lanes=8192):
    """Fused 1x1 Conv2d (bias=False) + BatchNorm2d (inference) + LeakyReLU.

    x: (N, C, H, W) float32, weight: (OC, C, 1, 1). Returns (N, OC, H, W) f32.
    """
    N, C, H, W = x.shape
    OC = weight.shape[0]
    HW = H * W

    # ---- fold BatchNorm (inference stats) into the matmul weight ----
    # TODO(synk): BatchNorm is inference-mode only (running stats); training-mode
    # batch statistics are not computed here.
    scale = gamma / jnp.sqrt(running_var + eps)
    shift = (beta - running_mean * scale).astype(jnp.float32).reshape(OC, 1)
    w2d = (weight.reshape(OC, C).astype(jnp.float32) * scale[:, None]).astype(mxu_dtype)

    # ---- lane-dense tiling: spatial axis (multiple of 128) on lanes ----
    tile = 128 * max(1, min(pl.cdiv(HW, 128), max_tile_lanes // 128))
    HW_pad = pl.cdiv(HW, tile) * tile

    x3 = x.reshape(N, C, HW)
    if HW_pad != HW:
        x3 = jnp.pad(x3, ((0, 0), (0, 0), (0, HW_pad - HW)))
    x3 = x3.astype(mxu_dtype)

    grid = (N, HW_pad // tile)

    # Explicit (v7x-safe) VMEM bound: double-buffered in/out blocks + headroom.
    elt = jnp.dtype(mxu_dtype).itemsize
    block_bytes = 2 * (tile * C * elt + tile * OC * 4) + 4 * OC * (C + 1)
    vmem_limit = int(min(32 * 1024 * 1024, max(16 * 1024 * 1024, 8 * block_bytes)))

    out = pl.pallas_call(
        functools.partial(_pw_conv_bn_leaky_kernel, leaky_slope=leaky_slope),
        out_shape=jax.ShapeDtypeStruct((N, OC, HW_pad), jnp.float32),
        grid_spec=pltpu.PrefetchScalarGridSpec(
            num_scalar_prefetch=0,
            grid=grid,
            in_specs=[
                pl.BlockSpec((1, C, tile), lambda n, t: (n, 0, t)),
                pl.BlockSpec((OC, C), lambda n, t: (0, 0)),
                pl.BlockSpec((OC, 1), lambda n, t: (0, 0)),
            ],
            out_specs=pl.BlockSpec((1, OC, tile), lambda n, t: (n, 0, t)),
        ),
        compiler_params=pltpu.CompilerParams(
            dimension_semantics=("parallel", "parallel"),
            vmem_limit_bytes=vmem_limit),
    )(x3, w2d, shift)

    return out[:, :, :HW].reshape(N, OC, H, W)


def nearest_upsample_2x(x):
    """nn.Upsample(scale_factor=2), nearest. Pure data movement -> plain XLA."""
    N, C, H, W = x.shape
    return jnp.broadcast_to(x[:, :, :, None, :, None],
                            (N, C, H, 2, W, 2)).reshape(N, C, 2 * H, 2 * W)


def fuse_stage_forward(left, right, left_params, right_params,
                       *, leaky_slope=0.1, eps=1e-5, mxu_dtype=jnp.float32):
    """FuseStage(is_reversal=False).forward((left, right))."""
    # TODO(synk): is_reversal=True branch (3x3 stride-2 Conv2dBatchLeaky) is not
    # implemented; only the default (is_reversal=False) path is covered.
    l = pointwise_conv_bn_leaky(left, *left_params, leaky_slope=leaky_slope,
                                eps=eps, mxu_dtype=mxu_dtype)
    r = pointwise_conv_bn_leaky(right, *right_params, leaky_slope=leaky_slope,
                                eps=eps, mxu_dtype=mxu_dtype)
    r = nearest_upsample_2x(r)
    return jnp.concatenate([l, r], axis=1)


def _ref_conv_bn_leaky(x, w, g, b, m, v, slope, eps):
    """Pure-JAX reference for the 1x1 Conv2dBatchLeaky (inference BN)."""
    oc, c = w.shape[0], w.shape[1]
    z = jnp.einsum('oc,nchw->nohw', w.reshape(oc, c), x)
    y = (z - m[None, :, None, None]) * (g / jnp.sqrt(v + eps))[None, :, None, None] \
        + b[None, :, None, None]
    return jnp.where(y > 0, y, slope * y)


if __name__ == "__main__":
    # FuseStage(in_filter=4, is_reversal=False):
    #   left_conv  = Conv2dBatchLeaky(4, 2, 1, 1)
    #   right_conv = Transition(4) = Conv2dBatchLeaky(4, 2, 1, 1) + Upsample(x2)
    # left: (2, 4, 16, 16), right: (2, 4, 8, 8)  ->  output (2, 4, 16, 16)
    in_filter = 4
    half = in_filter // 2
    N = 2
    leaky_slope, eps = 0.1, 1e-5

    key = jax.random.PRNGKey(0)
    ks = jax.random.split(key, 12)

    left = jax.random.normal(ks[0], (N, in_filter, 16, 16), dtype=jnp.float32)
    right = jax.random.normal(ks[1], (N, in_filter, 8, 8), dtype=jnp.float32)

    def make_params(k0, k1, k2, k3, k4):
        w = jax.random.normal(k0, (half, in_filter, 1, 1), dtype=jnp.float32) * 0.1
        g = 1.0 + 0.1 * jax.random.normal(k1, (half,), dtype=jnp.float32)
        b = 0.1 * jax.random.normal(k2, (half,), dtype=jnp.float32)
        m = 0.1 * jax.random.normal(k3, (half,), dtype=jnp.float32)
        v = jnp.abs(jax.random.normal(k4, (half,), dtype=jnp.float32)) + 0.5
        return (w, g, b, m, v)

    left_params = make_params(*ks[2:7])
    right_params = make_params(*ks[7:12])

    fuse = jax.jit(lambda l, r, lp, rp: fuse_stage_forward(
        l, r, lp, rp, leaky_slope=leaky_slope, eps=eps))
    out = fuse(left, right, left_params, right_params)
    jax.block_until_ready(out)
    assert out.shape == (N, 2 * half, 16, 16), out.shape

    # sanity check against a pure-JAX reference of the full FuseStage forward
    ref_l = _ref_conv_bn_leaky(left, *left_params, leaky_slope, eps)
    ref_r = nearest_upsample_2x(
        _ref_conv_bn_leaky(right, *right_params, leaky_slope, eps))
    ref = jnp.concatenate([ref_l, ref_r], axis=1)
    assert jnp.allclose(out, ref, rtol=2e-2, atol=2e-2), \
        float(jnp.max(jnp.abs(out - ref)))

    print("KERNEL_OK")
</pallas_src>

<mosaic_0001>
module attributes {stable_mosaic.version = 11 : i64} {
  func.func @_pw_conv_bn_leaky_kernel(%arg0: i32, %arg1: i32, %arg2: memref<1x4x128xf32, #tpu.memory_space<vmem>>, %arg3: memref<2x4xf32, #tpu.memory_space<vmem>>, %arg4: memref<2x1xf32, #tpu.memory_space<vmem>>, %arg5: memref<1x2x128xf32, #tpu.memory_space<vmem>>) attributes {dimension_semantics = [#tpu.dimension_semantics<parallel>, #tpu.dimension_semantics<parallel>], iteration_bounds = array<i64: 2, 1>, scalar_prefetch = 0 : i64, scratch_operands = 0 : i64, tpu.core_type = #tpu.core_type<tc>, window_params = [{transform_indices = @transform_0, window_bounds = array<i64: 1, 4, 128>}, {pipeline_mode = #tpu.pipeline_mode<synchronous>, transform_indices = @transform_1, window_bounds = array<i64: 2, 4>}, {pipeline_mode = #tpu.pipeline_mode<synchronous>, transform_indices = @transform_2, window_bounds = array<i64: 2, 1>}, {transform_indices = @transform_3, window_bounds = array<i64: 1, 2, 128>}]} {
    %c0 = arith.constant 0 : index
    %c0_0 = arith.constant 0 : index
    %0 = vector.load %arg3[%c0, %c0_0] : memref<2x4xf32, #tpu.memory_space<vmem>>, vector<2x4xf32>
    %c0_1 = arith.constant 0 : index
    %c0_2 = arith.constant 0 : index
    %c0_3 = arith.constant 0 : index
    %1 = vector.load %arg2[%c0_1, %c0_2, %c0_3] : memref<1x4x128xf32, #tpu.memory_space<vmem>>, vector<1x4x128xf32>
    %2 = vector.shape_cast %1 : vector<1x4x128xf32> to vector<4x128xf32>
    %cst = arith.constant dense<0.000000e+00> : vector<2x128xf32>
    %3 = tpu.matmul %0, %2, %cst {dimension_numbers = #tpu.dot_dimension_numbers<[1], [0], [0], [1], [0, 0, 1, 1], [], []>} : vector<2x4xf32>, vector<4x128xf32>, vector<2x128xf32> -> vector<2x128xf32>
    %c0_4 = arith.constant 0 : index
    %c0_5 = arith.constant 0 : index
    %4 = vector.load %arg4[%c0_4, %c0_5] : memref<2x1xf32, #tpu.memory_space<vmem>>, vector<2x1xf32>
    %5 = vector.broadcast %4 : vector<2x1xf32> to vector<2x128xf32>
    %6 = arith.addf %3, %5 : vector<2x128xf32>
    %cst_6 = arith.constant 0.000000e+00 : f32
    %7 = vector.broadcast %cst_6 : f32 to vector<2x128xf32>
    %8 = arith.cmpf ogt, %6, %7 : vector<2x128xf32>
    %cst_7 = arith.constant 1.000000e-01 : f32
    %9 = vector.broadcast %cst_7 : f32 to vector<2x128xf32>
    %10 = arith.mulf %9, %6 : vector<2x128xf32>
    %11 = arith.select %8, %6, %10 : vector<2x128xi1>, vector<2x128xf32>
    %c0_8 = arith.constant 0 : index
    %c0_9 = arith.constant 0 : index
    %c0_10 = arith.constant 0 : index
    %12 = vector.load %arg5[%c0_8, %c0_9, %c0_10] : memref<1x2x128xf32, #tpu.memory_space<vmem>>, vector<1x2x128xf32>
    %13 = vector.shape_cast %12 : vector<1x2x128xf32> to vector<2x128xf32>
    %14 = vector.shape_cast %11 : vector<2x128xf32> to vector<1x2x128xf32>
    tpu.vector_store %arg5[%c0_8, %c0_9, %c0_10], %14 {strides = array<i32>} : memref<1x2x128xf32, #tpu.memory_space<vmem>>, vector<1x2x128xf32>,
    return
  }
  func.func @transform_0(%arg0: i32, %arg1: i32) -> (i32, i32, i32) {
    %c0_i32 = arith.constant 0 : i32
    %c0_i32_0 = arith.constant 0 : i32
    return %arg0, %c0_i32, %arg1 : i32, i32, i32
  }
  func.func @transform_1(%arg0: i32, %arg1: i32) -> (i32, i32) {
    %c0_i32 = arith.constant 0 : i32
    %c0_i32_0 = arith.constant 0 : i32
    %c0_i32_1 = arith.constant 0 : i32
    return %c0_i32, %c0_i32_0 : i32, i32
  }
  func.func @transform_2(%arg0: i32, %arg1: i32) -> (i32, i32) {
    %c0_i32 = arith.constant 0 : i32
    %c0_i32_0 = arith.constant 0 : i32
    %c0_i32_1 = arith.constant 0 : i32
    return %c0_i32, %c0_i32_0 : i32, i32
  }
  func.func @transform_3(%arg0: i32, %arg1: i32) -> (i32, i32, i32) {
    %c0_i32 = arith.constant 0 : i32
    %c0_i32_0 = arith.constant 0 : i32
    return %arg0, %c0_i32, %arg1 : i32, i32, i32
  }
}

module attributes {stable_mosaic.version = 11 : i64} {
  func.func @_pw_conv_bn_leaky_kernel(%arg0: i32, %arg1: i32, %arg2: memref<1x4x256xf32, #tpu.memory_space<vmem>>, %arg3: memref<2x4xf32, #tpu.memory_space<vmem>>, %arg4: memref<2x1xf32, #tpu.memory_space<vmem>>, %arg5: memref<1x2x256xf32, #tpu.memory_space<vmem>>) attributes {dimension_semantics = [#tpu.dimension_semantics<parallel>, #tpu.dimension_semantics<parallel>], iteration_bounds = array<i64: 2, 1>, scalar_prefetch = 0 : i64, scratch_operands = 0 : i64, tpu.core_type = #tpu.core_type<tc>, window_params = [{transform_indices = @transform_0, window_bounds = array<i64: 1, 4, 256>}, {pipeline_mode = #tpu.pipeline_mode<synchronous>, transform_indices = @transform_1, window_bounds = array<i64: 2, 4>}, {pipeline_mode = #tpu.pipeline_mode<synchronous>, transform_indices = @transform_2, window_bounds = array<i64: 2, 1>}, {transform_indices = @transform_3, window_bounds = array<i64: 1, 2, 256>}]} {
    %c0 = arith.constant 0 : index
    %c0_0 = arith.constant 0 : index
    %0 = vector.load %arg3[%c0, %c0_0] : memref<2x4xf32, #tpu.memory_space<vmem>>, vector<2x4xf32>
    %c0_1 = arith.constant 0 : index
    %c0_2 = arith.constant 0 : index
    %c0_3 = arith.constant 0 : index
    %1 = vector.load %arg2[%c0_1, %c0_2, %c0_3] : memref<1x4x256xf32, #tpu.memory_space<vmem>>, vector<1x4x256xf32>
    %2 = vector.shape_cast %1 : vector<1x4x256xf32> to vector<4x256xf32>
    %cst = arith.constant dense<0.000000e+00> : vector<2x256xf32>
    %3 = tpu.matmul %0, %2, %cst {dimension_numbers = #tpu.dot_dimension_numbers<[1], [0], [0], [1], [0, 0, 1, 1], [], []>} : vector<2x4xf32>, vector<4x256xf32>, vector<2x256xf32> -> vector<2x256xf32>
    %c0_4 = arith.constant 0 : index
    %c0_5 = arith.constant 0 : index
    %4 = vector.load %arg4[%c0_4, %c0_5] : memref<2x1xf32, #tpu.memory_space<vmem>>, vector<2x1xf32>
    %5 = vector.broadcast %4 : vector<2x1xf32> to vector<2x256xf32>
    %6 = arith.addf %3, %5 : vector<2x256xf32>
    %cst_6 = arith.constant 0.000000e+00 : f32
    %7 = vector.broadcast %cst_6 : f32 to vector<2x256xf32>
    %8 = arith.cmpf ogt, %6, %7 : vector<2x256xf32>
    %cst_7 = arith.constant 1.000000e-01 : f32
    %9 = vector.broadcast %cst_7 : f32 to vector<2x256xf32>
    %10 = arith.mulf %9, %6 : vector<2x256xf32>
    %11 = arith.select %8, %6, %10 : vector<2x256xi1>, vector<2x256xf32>
    %c0_8 = arith.constant 0 : index
    %c0_9 = arith.constant 0 : index
    %c0_10 = arith.constant 0 : index
    %12 = vector.load %arg5[%c0_8, %c0_9, %c0_10] : memref<1x2x256xf32, #tpu.memory_space<vmem>>, vector<1x2x256xf32>
    %13 = vector.shape_cast %12 : vector<1x2x256xf32> to vector<2x256xf32>
    %14 = vector.shape_cast %11 : vector<2x256xf32> to vector<1x2x256xf32>
    tpu.vector_store %arg5[%c0_8, %c0_9, %c0_10], %14 {strides = array<i32>} : memref<1x2x256xf32, #tpu.memory_space<vmem>>, vector<1x2x256xf32>,
    return
  }
  func.func @transform_0(%arg0: i32, %arg1: i32) -> (i32, i32, i32) {
    %c0_i32 = arith.constant 0 : i32
    %c0_i32_0 = arith.constant 0 : i32
    return %arg0, %c0_i32, %arg1 : i32, i32, i32
  }
  func.func @transform_1(%arg0: i32, %arg1: i32) -> (i32, i32) {
    %c0_i32 = arith.constant 0 : i32
    %c0_i32_0 = arith.constant 0 : i32
    %c0_i32_1 = arith.constant 0 : i32
    return %c0_i32, %c0_i32_0 : i32, i32
  }
  func.func @transform_2(%arg0: i32, %arg1: i32) -> (i32, i32) {
    %c0_i32 = arith.constant 0 : i32
    %c0_i32_0 = arith.constant 0 : i32
    %c0_i32_1 = arith.constant 0 : i32
    return %c0_i32, %c0_i32_0 : i32, i32
  }
  func.func @transform_3(%arg0: i32, %arg1: i32) -> (i32, i32, i32) {
    %c0_i32 = arith.constant 0 : i32
    %c0_i32_0 = arith.constant 0 : i32
    return %arg0, %c0_i32, %arg1 : i32, i32, i32
  }
}

</mosaic_0001>

<bundles_post_ra>
// kernel: _lambda_.3
= control target key start
LH: loop header
LB: loop body
LE: loop exit
PB: predicated region body
PF: predicated region fallthrough
CT: control target
= control target key end

     0   :  { %s454_s12 = smov 0   ;;  %s456_s13 = smov 0   ;;  %s493_s0 = inlined_call_operand.vmem [shape: f32[2,4,128], index: 0, kind: input, shape index: {}]   ;;  %s494_s1 = inlined_call_operand.vmem [shape: f32[2,4], index: 1, kind: input, shape index: {}]   ;;  %s495_s2 = inlined_call_operand.vmem [shape: f32[2,1], index: 2, kind: input, shape index: {}]   ;;  %s496_s3 = inlined_call_operand.vmem [shape: f32[2,2,128], index: 3, kind: output, shape index: {}]  }
   0x1   :  { %s458_s14 = smov 0  }
   0x2 LB: > { %s25_s15 = sadd.s32 1, %s425_s13  ;;  %p365_p0 = scmp.ge.s32.totalorder %s429_s14, 1  ;;  %s429_s14 = sphi %s458_s14, %s13_s14   ;;  %s425_s13 = sphi %s456_s13, %s498_s13   ;;  %s421_s12 = sphi %s454_s12, %s497_s12  }
   0x3   : > { %p27_p1 = scmp.ge.s32.totalorder %s25_s15, 2  ;;  %p155_p2 = scmp.lt.s32.totalorder %s429_s14, 3 }
   0x5   : > { %s500_s15 = smov (%p27_p1, %s25_s15), 0  ;;  %p156_p3 = pnand %p365_p0, %p155_p2 }
   0x6   : > { %p183_p4 = scmp.lt.s32.totalorder (!%p156_p3), %s421_s12, 1  ;;  %v431_v0 = vmov (!%p156_p3), 0.0   ;;  %vm432_vm0 = vmmov (!%p156_p3), 0   ;;  %v199_v1 = vld [vmem:[%s495_s2] sm:$0x3] (!%p156_p3)  ;;  %v433_v2 = vmov (!%p156_p3), 0  }
   0x7   : > { %159 = sbr.rel (%p156_p3) target bundleno = 237 (0xed), region = 32  ;;  %374 = vmatprep.subr.mxu0 (!%p156_p3), %v431_v0  ;;  %376 = vmatprep.mubr.msk.f32.mxu0 (!%p156_p3), %vm432_vm0, %v431_v0  ;;  %vm209_vm1 = vcmask (!%p156_p3), 1043456   ;;  %v197_v3 = vld [vmem:[%s494_s1] sm:$0x3] (!%p156_p3)  ;;  %vm205_vm2 = vcmask (!%p156_p3), 31744  }
   0x8   : > { %406 = vset.pattern.permute.xlu0 (!%p156_p3), %v433_v2 }
   0x9   : > { %202 = vperm.xlu0 (!%p156_p3), %406, %v199_v1  }
   0xe   : > { %s502_s12 = smov (!%p183_p4, %s421_s12), 1 }
   0xf   : > { %s366_s18 = sshll.u32 %s502_s12, 2  ;;  %s367_s24 = sshll.u32 %s502_s12, 1 }
  0x10   : > { %s189_s21 = scalar_lea.vmem %s493_s0, %s366_s18  ;;  %s196_s27 = scalar_lea.vmem %s496_s3, %s367_s24 }
  0x11   : > { %v198_v4 = vld [vmem:[%s189_s21] sm:$0xf] }
  0x12   : > { %375 = vmatpush3.msk.msra.mxu0 %vm209_vm1, %v198_v4 }
  0x13   : > { %377 = vmatmul.mubr.msk.f32.vlgmr.msra.gmra.mrb[0].mxu0 %vm205_vm2, %v197_v3 }
  0x88   : > { %v203_v5 = vpop.permute.xlu0 %202 }
  0xe6   : > { %v279_v6 = vpop.f32.mrb[0].mxu0 }
  0xe7   : > { %v280_v7 = vadd.f32 %v279_v6, %v203_v5  ;;  %v378_v8 = vpop.f32.mrb[1].mxu0 }
  0xe9   : > { %vm283_vm3 = vcmp.gt.f32.partialorder %v280_v7, 0.0  ;;  %v284_v9 = vmul.f32 0.1, %v280_v7 }
  0xeb   : > { %v285_v10 = vsel %vm283_vm3, %v280_v7, %v284_v9 }
  0xec   : > { %286 = vst [vmem:[%s196_s27] sm:$0x3] %v285_v10 }
  0xed PF: > { %s13_s14 = sadd.s32 1, %s429_s14   ;;  %s497_s12 = smov %s425_s13 }
  0xee   : > { %p10_p5 = scmp.ge.s32.totalorder %s13_s14, 4   ;;  %s498_s13 = smov %s500_s15 }
  0xf0   :  { %12 = sbr.rel (!%p10_p5) target bundleno = 2 (0x2), region = 62 }

// kernel: _lambda_.2
= control target key start
LH: loop header
LB: loop body
LE: loop exit
PB: predicated region body
PF: predicated region fallthrough
CT: control target
= control target key end

     0   :  { %s496_s12 = smov 0   ;;  %s498_s13 = smov 0   ;;  %s535_s0 = inlined_call_operand.vmem [shape: f32[2,4,256], index: 0, kind: input, shape index: {}]   ;;  %s536_s1 = inlined_call_operand.vmem [shape: f32[2,4], index: 1, kind: input, shape index: {}]   ;;  %s537_s2 = inlined_call_operand.vmem [shape: f32[2,1], index: 2, kind: input, shape index: {}]   ;;  %s538_s3 = inlined_call_operand.vmem [shape: f32[2,2,256], index: 3, kind: output, shape index: {}]  }
   0x1   :  { %s500_s14 = smov 0  }
   0x2 LB: > { %s25_s15 = sadd.s32 1, %s468_s13  ;;  %p409_p0 = scmp.ge.s32.totalorder %s472_s14, 1  ;;  %s472_s14 = sphi %s500_s14, %s13_s14   ;;  %s468_s13 = sphi %s498_s13, %s540_s13   ;;  %s464_s12 = sphi %s496_s12, %s539_s12  }
   0x3   : > { %p27_p1 = scmp.ge.s32.totalorder %s25_s15, 2  ;;  %p158_p2 = scmp.lt.s32.totalorder %s472_s14, 3 }
   0x5   : > { %s542_s15 = smov (%p27_p1, %s25_s15), 0  ;;  %p159_p3 = pnand %p409_p0, %p158_p2 }
   0x6   : > { %p191_p4 = scmp.lt.s32.totalorder (!%p159_p3), %s464_s12, 1  ;;  %v474_v0 = vmov (!%p159_p3), 0.0   ;;  %v212_v1 = vld [vmem:[%s537_s2] sm:$0x3] (!%p159_p3)  ;;  %v475_v2 = vmov (!%p159_p3), 0   ;;  %vm224_vm0 = vcmask (!%p159_p3), 1043456  }
   0x7   : > { %162 = sbr.rel (%p159_p3) target bundleno = 243 (0xf3), region = 32  ;;  %293 = vmatprep.mubr.f32.mxu0 (!%p159_p3), %v474_v0  ;;  %448 = vset.pattern.permute.xlu0 (!%p159_p3), %v475_v2  ;;  %v210_v5 = vld [vmem:[%s536_s1] sm:$0x3] (!%p159_p3)  ;;  %vm220_vm1 = vcmask (!%p159_p3), 31744  }
   0x8   : > { %215 = vperm.xlu0 (!%p159_p3), %448, %v212_v1  }
   0xe   : > { %s544_s12 = smov (!%p191_p4, %s464_s12), 1 }
   0xf   : > { %s420_s18 = sshll.u32 %s544_s12, 3  ;;  %s421_s24 = sshll.u32 %s544_s12, 2 }
  0x10   : > { %s198_s21 = scalar_lea.vmem %s535_s0, %s420_s18  ;;  %s208_s27 = scalar_lea.vmem %s538_s3, %s421_s24 }
  0x11   : > { %v211_v3 = vld [vmem:[%s198_s21] sm:$0xff] }
  0x12   : > { %v219_v4 = vcombine.high %v211_v3, %v211_v3 }
  0x14   : > { %414 = vmatprep.subr.msk.mxu0 %vm224_vm0, %v219_v4 }
  0x15   : > { %415 = vmatpush1.msk.msra.mxu0 %vm224_vm0, %v211_v3 }
  0x16   : > { %416 = vmatmul.mubr.msk.f32.vlgmr.msra.gmra.mrb[0].mxu0 %vm220_vm1, %v210_v5 }
  0x87   : > { %v216_v6 = vpop.permute.xlu0 %215 }
  0xe9   : > { %v295_v7 = vpop.f32.mrb[0].mxu0 }
  0xea   : > { %v296_v8 = vadd.f32 %v295_v7, %v216_v6  ;;  %v297_v9 = vpop.f32.mrb[1].mxu0 }
  0xeb   : > { %v298_v10 = vadd.f32 %v297_v9, %v216_v6 }
  0xec   : > { %vm300_vm2 = vcmp.gt.f32.partialorder %v296_v8, 0.0  ;;  %v302_v11 = vmul.f32 0.1, %v296_v8 }
  0xed   : > { %vm301_vm3 = vcmp.gt.f32.partialorder %v298_v10, 0.0  ;;  %v303_v12 = vmul.f32 0.1, %v298_v10 }
  0xee   : > { %v304_v13 = vsel %vm300_vm2, %v296_v8, %v302_v11 }
  0xef   : > { %v305_v14 = vsel %vm301_vm3, %v298_v10, %v303_v12 }
  0xf0   : > { %v308_v15 = vcombine.low %v304_v13, %v305_v14 }
  0xf2   : > { %417 = vst.sshfl [vmem:[%s208_s27] sm:$0x33 pattern:$0x76325410] %v308_v15 }
  0xf3 PF: > { %s13_s14 = sadd.s32 1, %s472_s14   ;;  %s539_s12 = smov %s468_s13 }
  0xf4   : > { %p10_p5 = scmp.ge.s32.totalorder %s13_s14, 4   ;;  %s540_s13 = smov %s542_s15 }
  0xf6   :  { %12 = sbr.rel (!%p10_p5) target bundleno = 2 (0x2), region = 62 }

</bundles_post_ra>
